<compile_context>
chip_gen: v6e
topology: v6e:2x2x1
jax: 0.10.0
libtpu: 0.0.40
codegen_flags: <defaults>
</compile_context>

<pallas_src>
import functools

import jax
import jax.numpy as jnp
from jax.experimental import pallas as pl
from jax.experimental.pallas import tpu as pltpu

INPUT_DIM = 3
HIDDEN = [64, 64, 64, 64]
INIT_SCALE = 0.1
_LANE = 128


def _silu_f32(y):
    # SiLU with a single EUP transcendental: sigmoid(y) = 0.5*(1 + tanh(y/2)).
    return y * (0.5 + 0.5 * jnp.tanh(0.5 * y))


def _mlp_kernel(x_ref, *refs, compute_dtype):
    """Fused batch-on-lanes MLP.

    x_ref : (input_dim, block_n)   -- batch on the 128-lane axis, f32
    refs  : w1, b1, ..., wL, bL, o_ref
            w_k : (out_k, in_k)  torch nn.Linear layout (hidden w may be bf16)
            b_k : (out_k, 1)     f32, broadcasts across lanes
            o   : (1, block_n)   lane-dense output
    """
    o_ref = refs[-1]
    param_refs = refs[:-1]
    n_layers = len(param_refs) // 2

    h = x_ref[...]  # (d_in, block) f32

    for l in range(n_layers):
        w = param_refs[2 * l][...]
        b = param_refs[2 * l + 1][...]
        d_out, d_in = w.shape
        is_last = l == n_layers - 1

        if l == 0 and d_in <= 8:
            # Tiny-K contraction: do it as d_in VPU FMAs in f32 (keeps the
            # coordinate precision and skips a padded MXU pass).
            wf = w.astype(jnp.float32)
            hf = h.astype(jnp.float32)
            y = b.astype(jnp.float32)
            for c in range(d_in):
                y = y + wf[:, c:c + 1] * hf[c:c + 1, :]
        elif is_last and d_out == 1:
            # M = 1 output: VPU broadcast-multiply + XLU cross-sublane reduce.
            y = jnp.sum(w.astype(jnp.float32).T * h.astype(jnp.float32),
                        axis=0, keepdims=True) + b.astype(jnp.float32)
        else:
            # 64x64 hidden layers on the MXU, f32 accumulation.
            y = jnp.dot(w, h.astype(w.dtype),
                        preferred_element_type=jnp.float32)
            y = y + b.astype(jnp.float32)

        if is_last:
            o_ref[...] = y.astype(o_ref.dtype)
        else:
            h = _silu_f32(y).astype(compute_dtype)


def init_params(key, input_dim=INPUT_DIM, hidden=HIDDEN, init_scale=INIT_SCALE):
    """Kaiming-normal fan_in init (gain sqrt(2)) matching the torch module's
    _init_weights: biases zero, output-layer weights scaled by init_scale.
    Weights stored torch-style as (out, in); biases as (out, 1), all f32."""
    dims = [input_dim] + list(hidden) + [1]
    params = []
    for d_in, d_out in zip(dims[:-1], dims[1:]):
        key, sub = jax.random.split(key)
        std = jnp.sqrt(2.0 / d_in)
        w = jax.random.normal(sub, (d_out, d_in), dtype=jnp.float32) * std
        if d_out == 1:
            w = w * init_scale
        b = jnp.zeros((d_out, 1), dtype=jnp.float32)
        params.append((w, b))
    return params


@functools.partial(jax.jit,
                   static_argnames=("block_n", "use_bf16", "transposed"))
def electric_potential_forward(r, params, *, block_n=8192, use_bf16=False,
                               transposed=False):
    """Forward pass of ElectricPotentialNN.

    r: (N, input_dim) f32 (or (input_dim, N) if transposed=True) -> (N, 1) f32.
    block_n:   batch tile on the lane axis (multiple of 128); clamped to the
               lane-padded batch; sweep 4096-16384 for large N.
    use_bf16:  bf16 hidden compute (recommended on v6e/v7x; keep False on v5e
               or when comparing bit-tightly against an f32 reference).
    transposed: set True if the caller already holds r as (input_dim, N) to
               avoid the wrapper-side HBM transpose.
    """
    assert block_n % _LANE == 0, "block_n must be a multiple of 128"

    if transposed:
        d_in, n = r.shape
        x = r.astype(jnp.float32)
    else:
        n, d_in = r.shape
        x = r.T.astype(jnp.float32)

    # Lane-dense batch tiling.
    n_lanes = pl.cdiv(n, _LANE) * _LANE
    block = min(block_n, n_lanes)
    # Ensure >= 2 grid steps when possible so the "parallel" batch axis can
    # occupy both TensorCores on v7x.
    if block >= n_lanes and n_lanes >= 2 * _LANE:
        block = pl.cdiv(pl.cdiv(n_lanes, 2), _LANE) * _LANE
    n_pad = pl.cdiv(n_lanes, block) * block
    if n_pad != n:
        x = jnp.pad(x, ((0, 0), (0, n_pad - n)))

    n_layers = len(params)
    compute_dtype = jnp.bfloat16 if use_bf16 else jnp.float32

    flat_params = []
    in_specs = [pl.BlockSpec((d_in, block), lambda i: (0, i))]
    for l, (w, b) in enumerate(params):
        # Pre-cast MXU-bound hidden weights once in the wrapper (no per-step
        # casts in the kernel); first (VPU, f32) and last (VPU+XLU, f32) layers
        # keep f32 weights.
        if use_bf16 and 0 < l < n_layers - 1:
            w = w.astype(jnp.bfloat16)
        flat_params += [w, b]
        in_specs.append(pl.BlockSpec(w.shape, lambda i: (0, 0)))
        in_specs.append(pl.BlockSpec(b.shape, lambda i: (0, 0)))

    out_spec = pl.BlockSpec((1, block), lambda i: (0, i))

    # Advisory cost estimate (tanh formulation -> exactly 1 transcendental per
    # hidden unit).
    flops = 2 * n_pad * sum(int(w.size) for w, _ in params)
    transcendentals = n_pad * sum(int(w.shape[0]) for w, _ in params[:-1])
    bytes_accessed = (n_pad * (d_in + 1) * 4
                      + sum(int(w.size) * w.dtype.itemsize + int(b.size) * 4
                            for w, b in params))

    kernel = functools.partial(_mlp_kernel, compute_dtype=compute_dtype)

    out = pl.pallas_call(
        kernel,
        out_shape=jax.ShapeDtypeStruct((1, n_pad), jnp.float32),
        grid_spec=pltpu.PrefetchScalarGridSpec(
            num_scalar_prefetch=0,
            grid=(n_pad // block,),
            in_specs=in_specs,
            out_specs=out_spec,
        ),
        compiler_params=pltpu.CompilerParams(
            # "parallel" lets the batch axis shard across TensorCores on
            # megacore parts (v7x). TODO(synk): if profiling shows a single TC
            # active on v7x, switch to pltpu.CORE_PARALLEL on this axis.
            dimension_semantics=("parallel",),
            vmem_limit_bytes=32 * 1024 * 1024,
        ),
        cost_estimate=pl.CostEstimate(
            flops=flops,
            transcendentals=transcendentals,
            bytes_accessed=bytes_accessed),
    )(x, *flat_params)

    return out[0, :n][:, None]


def _reference_forward(r, params):
    h = r
    for i, (w, b) in enumerate(params):
        h = h @ w.T + b.T
        if i < len(params) - 1:
            h = jax.nn.silu(h)
    return h


if __name__ == "__main__":
    key = jax.random.PRNGKey(0)
    k_param, k_x = jax.random.split(key)

    params = init_params(k_param)

    # Small shapes: a lane-aligned batch and a ragged one (exercises padding
    # and the >=2-grid-step split).
    for n in (256, 100):
        k_x, sub = jax.random.split(k_x)
        r = jax.random.normal(sub, (n, INPUT_DIM), dtype=jnp.float32)

        ref = _reference_forward(r, params)

        # f32 path: tight check.
        phi = jax.block_until_ready(electric_potential_forward(r, params))
        assert phi.shape == (n, 1)
        assert jnp.allclose(phi, ref, atol=1e-5, rtol=1e-5), "f32 mismatch"

        # bf16 hidden-compute path (v6e/v7x option): loose check only.
        phi_bf16 = jax.block_until_ready(
            electric_potential_forward(r, params, use_bf16=True))
        assert phi_bf16.shape == (n, 1)
        assert bool(jnp.all(jnp.isfinite(phi_bf16)))
        assert jnp.allclose(phi_bf16, ref, atol=1e-1, rtol=1e-1), "bf16 mismatch"

    # TODO(synk): laplacian / compute_electric_field are torch.autograd based;
    # pallas_call is not differentiable without a custom_vjp, so implement the
    # gradient/Laplacian either analytically in a sibling kernel or via
    # jax.custom_vjp around electric_potential_forward.
    print("KERNEL_OK")
</pallas_src>

<mosaic_0001>
module attributes {stable_mosaic.version = 11 : i64} {
  func.func @_mlp_kernel(%arg0: i32, %arg1: memref<3x128xf32, #tpu.memory_space<vmem>>, %arg2: memref<64x3xf32, #tpu.memory_space<vmem>>, %arg3: memref<64x1xf32, #tpu.memory_space<vmem>>, %arg4: memref<64x64xf32, #tpu.memory_space<vmem>>, %arg5: memref<64x1xf32, #tpu.memory_space<vmem>>, %arg6: memref<64x64xf32, #tpu.memory_space<vmem>>, %arg7: memref<64x1xf32, #tpu.memory_space<vmem>>, %arg8: memref<64x64xf32, #tpu.memory_space<vmem>>, %arg9: memref<64x1xf32, #tpu.memory_space<vmem>>, %arg10: memref<1x64xf32, #tpu.memory_space<vmem>>, %arg11: memref<1x1xf32, #tpu.memory_space<vmem>>, %arg12: memref<1x128xf32, #tpu.memory_space<vmem>>) attributes {dimension_semantics = [#tpu.dimension_semantics<parallel>], iteration_bounds = array<i64: 2>, scalar_prefetch = 0 : i64, scratch_operands = 0 : i64, tpu.core_type = #tpu.core_type<tc>, window_params = [{transform_indices = @transform_0, window_bounds = array<i64: 3, 128>}, {pipeline_mode = #tpu.pipeline_mode<synchronous>, transform_indices = @transform_1, window_bounds = array<i64: 64, 3>}, {pipeline_mode = #tpu.pipeline_mode<synchronous>, transform_indices = @transform_2, window_bounds = array<i64: 64, 1>}, {pipeline_mode = #tpu.pipeline_mode<synchronous>, transform_indices = @transform_3, window_bounds = array<i64: 64, 64>}, {pipeline_mode = #tpu.pipeline_mode<synchronous>, transform_indices = @transform_4, window_bounds = array<i64: 64, 1>}, {pipeline_mode = #tpu.pipeline_mode<synchronous>, transform_indices = @transform_5, window_bounds = array<i64: 64, 64>}, {pipeline_mode = #tpu.pipeline_mode<synchronous>, transform_indices = @transform_6, window_bounds = array<i64: 64, 1>}, {pipeline_mode = #tpu.pipeline_mode<synchronous>, transform_indices = @transform_7, window_bounds = array<i64: 64, 64>}, {pipeline_mode = #tpu.pipeline_mode<synchronous>, transform_indices = @transform_8, window_bounds = array<i64: 64, 1>}, {pipeline_mode = #tpu.pipeline_mode<synchronous>, transform_indices = @transform_9, window_bounds = array<i64: 1, 64>}, {pipeline_mode = #tpu.pipeline_mode<synchronous>, transform_indices = @transform_10, window_bounds = array<i64: 1, 1>}, {transform_indices = @transform_11, window_bounds = array<i64: 1, 128>}]} {
    %c0 = arith.constant 0 : index
    %c0_0 = arith.constant 0 : index
    %0 = vector.load %arg1[%c0, %c0_0] : memref<3x128xf32, #tpu.memory_space<vmem>>, vector<3x128xf32>
    %c0_1 = arith.constant 0 : index
    %c0_2 = arith.constant 0 : index
    %1 = vector.load %arg2[%c0_1, %c0_2] : memref<64x3xf32, #tpu.memory_space<vmem>>, vector<64x3xf32>
    %c0_3 = arith.constant 0 : index
    %c0_4 = arith.constant 0 : index
    %2 = vector.load %arg3[%c0_3, %c0_4] : memref<64x1xf32, #tpu.memory_space<vmem>>, vector<64x1xf32>
    %3 = vector.extract_strided_slice %1 {offsets = [0, 0], sizes = [64, 1], strides = [1, 1]} : vector<64x3xf32> to vector<64x1xf32>
    %4 = vector.extract_strided_slice %0 {offsets = [0, 0], sizes = [1, 128], strides = [1, 1]} : vector<3x128xf32> to vector<1x128xf32>
    %5 = vector.broadcast %3 : vector<64x1xf32> to vector<64x128xf32>
    %6 = vector.broadcast %4 : vector<1x128xf32> to vector<64x128xf32>
    %7 = arith.mulf %5, %6 : vector<64x128xf32>
    %8 = vector.broadcast %2 : vector<64x1xf32> to vector<64x128xf32>
    %9 = arith.addf %8, %7 : vector<64x128xf32>
    %10 = vector.extract_strided_slice %1 {offsets = [0, 1], sizes = [64, 1], strides = [1, 1]} : vector<64x3xf32> to vector<64x1xf32>
    %11 = vector.extract_strided_slice %0 {offsets = [1, 0], sizes = [1, 128], strides = [1, 1]} : vector<3x128xf32> to vector<1x128xf32>
    %12 = vector.broadcast %10 : vector<64x1xf32> to vector<64x128xf32>
    %13 = vector.broadcast %11 : vector<1x128xf32> to vector<64x128xf32>
    %14 = arith.mulf %12, %13 : vector<64x128xf32>
    %15 = arith.addf %9, %14 : vector<64x128xf32>
    %16 = vector.extract_strided_slice %1 {offsets = [0, 2], sizes = [64, 1], strides = [1, 1]} : vector<64x3xf32> to vector<64x1xf32>
    %17 = vector.extract_strided_slice %0 {offsets = [2, 0], sizes = [1, 128], strides = [1, 1]} : vector<3x128xf32> to vector<1x128xf32>
    %18 = vector.broadcast %16 : vector<64x1xf32> to vector<64x128xf32>
    %19 = vector.broadcast %17 : vector<1x128xf32> to vector<64x128xf32>
    %20 = arith.mulf %18, %19 : vector<64x128xf32>
    %21 = arith.addf %15, %20 : vector<64x128xf32>
    %cst = arith.constant 5.000000e-01 : f32
    %22 = vector.broadcast %cst : f32 to vector<64x128xf32>
    %23 = arith.mulf %22, %21 : vector<64x128xf32>
    %24 = math.tanh %23 : vector<64x128xf32>
    %cst_5 = arith.constant 5.000000e-01 : f32
    %25 = vector.broadcast %cst_5 : f32 to vector<64x128xf32>
    %26 = arith.mulf %25, %24 : vector<64x128xf32>
    %cst_6 = arith.constant 5.000000e-01 : f32
    %27 = vector.broadcast %cst_6 : f32 to vector<64x128xf32>
    %28 = arith.addf %27, %26 : vector<64x128xf32>
    %29 = arith.mulf %21, %28 : vector<64x128xf32>
    %c0_7 = arith.constant 0 : index
    %c0_8 = arith.constant 0 : index
    %30 = vector.load %arg4[%c0_7, %c0_8] : memref<64x64xf32, #tpu.memory_space<vmem>>, vector<64x64xf32>
    %c0_9 = arith.constant 0 : index
    %c0_10 = arith.constant 0 : index
    %31 = vector.load %arg5[%c0_9, %c0_10] : memref<64x1xf32, #tpu.memory_space<vmem>>, vector<64x1xf32>
    %cst_11 = arith.constant dense<0.000000e+00> : vector<64x128xf32>
    %32 = tpu.matmul %30, %29, %cst_11 {dimension_numbers = #tpu.dot_dimension_numbers<[1], [0], [0], [1], [0, 0, 1, 1], [], []>} : vector<64x64xf32>, vector<64x128xf32>, vector<64x128xf32> -> vector<64x128xf32>
    %33 = vector.broadcast %31 : vector<64x1xf32> to vector<64x128xf32>
    %34 = arith.addf %32, %33 : vector<64x128xf32>
    %cst_12 = arith.constant 5.000000e-01 : f32
    %35 = vector.broadcast %cst_12 : f32 to vector<64x128xf32>
    %36 = arith.mulf %35, %34 : vector<64x128xf32>
    %37 = math.tanh %36 : vector<64x128xf32>
    %cst_13 = arith.constant 5.000000e-01 : f32
    %38 = vector.broadcast %cst_13 : f32 to vector<64x128xf32>
    %39 = arith.mulf %38, %37 : vector<64x128xf32>
    %cst_14 = arith.constant 5.000000e-01 : f32
    %40 = vector.broadcast %cst_14 : f32 to vector<64x128xf32>
    %41 = arith.addf %40, %39 : vector<64x128xf32>
    %42 = arith.mulf %34, %41 : vector<64x128xf32>
    %c0_15 = arith.constant 0 : index
    %c0_16 = arith.constant 0 : index
    %43 = vector.load %arg6[%c0_15, %c0_16] : memref<64x64xf32, #tpu.memory_space<vmem>>, vector<64x64xf32>
    %c0_17 = arith.constant 0 : index
    %c0_18 = arith.constant 0 : index
    %44 = vector.load %arg7[%c0_17, %c0_18] : memref<64x1xf32, #tpu.memory_space<vmem>>, vector<64x1xf32>
    %cst_19 = arith.constant dense<0.000000e+00> : vector<64x128xf32>
    %45 = tpu.matmul %43, %42, %cst_19 {dimension_numbers = #tpu.dot_dimension_numbers<[1], [0], [0], [1], [0, 0, 1, 1], [], []>} : vector<64x64xf32>, vector<64x128xf32>, vector<64x128xf32> -> vector<64x128xf32>
    %46 = vector.broadcast %44 : vector<64x1xf32> to vector<64x128xf32>
    %47 = arith.addf %45, %46 : vector<64x128xf32>
    %cst_20 = arith.constant 5.000000e-01 : f32
    %48 = vector.broadcast %cst_20 : f32 to vector<64x128xf32>
    %49 = arith.mulf %48, %47 : vector<64x128xf32>
    %50 = math.tanh %49 : vector<64x128xf32>
    %cst_21 = arith.constant 5.000000e-01 : f32
    %51 = vector.broadcast %cst_21 : f32 to vector<64x128xf32>
    %52 = arith.mulf %51, %50 : vector<64x128xf32>
    %cst_22 = arith.constant 5.000000e-01 : f32
    %53 = vector.broadcast %cst_22 : f32 to vector<64x128xf32>
    %54 = arith.addf %53, %52 : vector<64x128xf32>
    %55 = arith.mulf %47, %54 : vector<64x128xf32>
    %c0_23 = arith.constant 0 : index
    %c0_24 = arith.constant 0 : index
    %56 = vector.load %arg8[%c0_23, %c0_24] : memref<64x64xf32, #tpu.memory_space<vmem>>, vector<64x64xf32>
    %c0_25 = arith.constant 0 : index
    %c0_26 = arith.constant 0 : index
    %57 = vector.load %arg9[%c0_25, %c0_26] : memref<64x1xf32, #tpu.memory_space<vmem>>, vector<64x1xf32>
    %cst_27 = arith.constant dense<0.000000e+00> : vector<64x128xf32>
    %58 = tpu.matmul %56, %55, %cst_27 {dimension_numbers = #tpu.dot_dimension_numbers<[1], [0], [0], [1], [0, 0, 1, 1], [], []>} : vector<64x64xf32>, vector<64x128xf32>, vector<64x128xf32> -> vector<64x128xf32>
    %59 = vector.broadcast %57 : vector<64x1xf32> to vector<64x128xf32>
    %60 = arith.addf %58, %59 : vector<64x128xf32>
    %cst_28 = arith.constant 5.000000e-01 : f32
    %61 = vector.broadcast %cst_28 : f32 to vector<64x128xf32>
    %62 = arith.mulf %61, %60 : vector<64x128xf32>
    %63 = math.tanh %62 : vector<64x128xf32>
    %cst_29 = arith.constant 5.000000e-01 : f32
    %64 = vector.broadcast %cst_29 : f32 to vector<64x128xf32>
    %65 = arith.mulf %64, %63 : vector<64x128xf32>
    %cst_30 = arith.constant 5.000000e-01 : f32
    %66 = vector.broadcast %cst_30 : f32 to vector<64x128xf32>
    %67 = arith.addf %66, %65 : vector<64x128xf32>
    %68 = arith.mulf %60, %67 : vector<64x128xf32>
    %c0_31 = arith.constant 0 : index
    %c0_32 = arith.constant 0 : index
    %69 = vector.load %arg10[%c0_31, %c0_32] : memref<1x64xf32, #tpu.memory_space<vmem>>, vector<1x64xf32>
    %c0_33 = arith.constant 0 : index
    %c0_34 = arith.constant 0 : index
    %70 = vector.load %arg11[%c0_33, %c0_34] : memref<1x1xf32, #tpu.memory_space<vmem>>, vector<1x1xf32>
    %71 = tpu.transpose %69, [1, 0] : vector<1x64xf32> -> vector<64x1xf32>
    %72 = vector.broadcast %71 : vector<64x1xf32> to vector<64x128xf32>
    %73 = arith.mulf %72, %68 : vector<64x128xf32>
    %cst_35 = arith.constant dense<0.000000e+00> : vector<128xf32>
    %74 = vector.multi_reduction <add>, %73, %cst_35 [0] : vector<64x128xf32> to vector<128xf32>
    %75 = vector.shape_cast %74 : vector<128xf32> to vector<1x128xf32>
    %76 = vector.broadcast %70 : vector<1x1xf32> to vector<1x128xf32>
    %77 = arith.addf %75, %76 : vector<1x128xf32>
    %c0_36 = arith.constant 0 : index
    %c0_37 = arith.constant 0 : index
    %78 = vector.load %arg12[%c0_36, %c0_37] : memref<1x128xf32, #tpu.memory_space<vmem>>, vector<1x128xf32>
    tpu.vector_store %arg12[%c0_36, %c0_37], %77 {strides = array<i32>} : memref<1x128xf32, #tpu.memory_space<vmem>>, vector<1x128xf32>,
    return
  }
  func.func @transform_0(%arg0: i32) -> (i32, i32) {
    %c0_i32 = arith.constant 0 : i32
    %c0_i32_0 = arith.constant 0 : i32
    return %c0_i32, %arg0 : i32, i32
  }
  func.func @transform_1(%arg0: i32) -> (i32, i32) {
    %c0_i32 = arith.constant 0 : i32
    %c0_i32_0 = arith.constant 0 : i32
    %c0_i32_1 = arith.constant 0 : i32
    return %c0_i32, %c0_i32_0 : i32, i32
  }
  func.func @transform_2(%arg0: i32) -> (i32, i32) {
    %c0_i32 = arith.constant 0 : i32
    %c0_i32_0 = arith.constant 0 : i32
    %c0_i32_1 = arith.constant 0 : i32
    return %c0_i32, %c0_i32_0 : i32, i32
  }
  func.func @transform_3(%arg0: i32) -> (i32, i32) {
    %c0_i32 = arith.constant 0 : i32
    %c0_i32_0 = arith.constant 0 : i32
    %c0_i32_1 = arith.constant 0 : i32
    return %c0_i32, %c0_i32_0 : i32, i32
  }
  func.func @transform_4(%arg0: i32) -> (i32, i32) {
    %c0_i32 = arith.constant 0 : i32
    %c0_i32_0 = arith.constant 0 : i32
    %c0_i32_1 = arith.constant 0 : i32
    return %c0_i32, %c0_i32_0 : i32, i32
  }
  func.func @transform_5(%arg0: i32) -> (i32, i32) {
    %c0_i32 = arith.constant 0 : i32
    %c0_i32_0 = arith.constant 0 : i32
    %c0_i32_1 = arith.constant 0 : i32
    return %c0_i32, %c0_i32_0 : i32, i32
  }
  func.func @transform_6(%arg0: i32) -> (i32, i32) {
    %c0_i32 = arith.constant 0 : i32
    %c0_i32_0 = arith.constant 0 : i32
    %c0_i32_1 = arith.constant 0 : i32
    return %c0_i32, %c0_i32_0 : i32, i32
  }
  func.func @transform_7(%arg0: i32) -> (i32, i32) {
    %c0_i32 = arith.constant 0 : i32
    %c0_i32_0 = arith.constant 0 : i32
    %c0_i32_1 = arith.constant 0 : i32
    return %c0_i32, %c0_i32_0 : i32, i32
  }
  func.func @transform_8(%arg0: i32) -> (i32, i32) {
    %c0_i32 = arith.constant 0 : i32
    %c0_i32_0 = arith.constant 0 : i32
    %c0_i32_1 = arith.constant 0 : i32
    return %c0_i32, %c0_i32_0 : i32, i32
  }
  func.func @transform_9(%arg0: i32) -> (i32, i32) {
    %c0_i32 = arith.constant 0 : i32
    %c0_i32_0 = arith.constant 0 : i32
    %c0_i32_1 = arith.constant 0 : i32
    return %c0_i32, %c0_i32_0 : i32, i32
  }
  func.func @transform_10(%arg0: i32) -> (i32, i32) {
    %c0_i32 = arith.constant 0 : i32
    %c0_i32_0 = arith.constant 0 : i32
    %c0_i32_1 = arith.constant 0 : i32
    return %c0_i32, %c0_i32_0 : i32, i32
  }
  func.func @transform_11(%arg0: i32) -> (i32, i32) {
    %c0_i32 = arith.constant 0 : i32
    %c0_i32_0 = arith.constant 0 : i32
    return %c0_i32, %arg0 : i32, i32
  }
}

</mosaic_0001>

<bundles_post_ra>
// kernel: electric_potential_forward.1
= control target key start
LH: loop header
LB: loop body
LE: loop exit
PB: predicated region body
PF: predicated region fallthrough
CT: control target
= control target key end

     0   :  { %s2355_s0 = inlined_call_operand.vmem [shape: f32[3,256], index: 0, kind: input, shape index: {}]   ;;  %s2356_s1 = inlined_call_operand.vmem [shape: f32[64,3], index: 1, kind: input, shape index: {}]   ;;  %s2357_s2 = inlined_call_operand.vmem [shape: f32[64,1], index: 2, kind: input, shape index: {}]   ;;  %s2358_s3 = inlined_call_operand.vmem [shape: f32[64,64], index: 3, kind: input, shape index: {}]   ;;  %s2359_s4 = inlined_call_operand.vmem [shape: f32[64,1], index: 4, kind: input, shape index: {}]   ;;  %s2360_s5 = inlined_call_operand.vmem [shape: f32[64,64], index: 5, kind: input, shape index: {}]   ;;  %s2361_s6 = inlined_call_operand.vmem [shape: f32[64,1], index: 6, kind: input, shape index: {}]   ;;  %s2362_s7 = inlined_call_operand.vmem [shape: f32[64,64], index: 7, kind: input, shape index: {}]   ;;  %s2363_s8 = inlined_call_operand.vmem [shape: f32[64,1], index: 8, kind: input, shape index: {}]   ;;  %s2364_s9 = inlined_call_operand.vmem [shape: f32[1,64], index: 9, kind: input, shape index: {}]   ;;  %s2365_s10 = inlined_call_operand.<no memory space> [shape: f32[1,1], index: 10, kind: input, shape index: {}]   ;;  %s2366_s11 = inlined_call_operand.hbm [shape: f32[1,256], index: 11, kind: output, shape index: {}]  }
   0x1   :  { %2367 = sst [smem:[#allocation6_spill]] %s2355_s0  ;;  %v16_v0 = vstv %s2365_s10 }
   0x2   :  { %17 = vst [vmem:[#allocation2] sm:$0x1] %v16_v0 }
   0x3   :  { %18 = vsyncpa [#allocation4], 0 }
   0x4   :  { %20 = vsyncpa [#allocation4 + $0x1], 0  ;;  %s1934_s19 = smov 0   ;;  %s1936_s20 = smov 0  }
   0x5   :  { %s1938_s21 = smov 0   ;;  %s1940_s22 = smov 0  }
   0x6 LB: > { %s1955_s10 = sadd.s32 4294967295, %s1865_s22   ;;  %s1494_s23 = sadd.s32 4294967294, %s1865_s22   ;;  %s1865_s22 = sphi %s1940_s22, %s2374_s22   ;;  %s1861_s21 = sphi %s1938_s21, %s2373_s21   ;;  %s1857_s20 = sphi %s1936_s20, %s2372_s20   ;;  %s1853_s19 = sphi %s1934_s19, %s2371_s19  }
   0x7   : > { %s1959_s24 = sadd.s32 1, %s1865_s22   ;;  %s269_s25 = sadd.s32 1, %s1861_s21 }
   0x8   : > { %s266_s26 = ssub.s32 %s1865_s22, %s1959_s24  ;;  %p279_p0 = scmp.ne.s32.totalorder %s1861_s21, %s1857_s20 }
   0x9   : > { %p267_p1 = scmp.eq.s32.totalorder %s266_s26, 0  ;;  %p280_p2 = scmp.eq.s32.totalorder %s1955_s10, 1 }
   0xa   : > { %p285_p3 = scmp.ne.s32.totalorder %s1857_s20, %s1853_s19  ;;  %p286_p4 = scmp.eq.s32.totalorder %s1494_s23, 1 }
   0xb   : > { %s1970_s27 = scalar_select %p267_p1, %s1861_s21, %s269_s25  }
   0xc   : > { %p1972_p5 = por %p280_p2, %p279_p0  ;;  %p1976_p6 = por %p286_p4, %p285_p3 }
   0xd   : > { %p1497_p7 = scmp.ge.s32.totalorder %s1865_s22, 1  ;;  %p341_p8 = scmp.lt.s32.totalorder %s1865_s22, 3 }
   0xf   : > { %p342_p9 = pnand %p1497_p7, %p341_p8 }
  0x10   : > { %p379_p10 = scmp.lt.s32.totalorder (!%p342_p9), %s1955_s10, 1  ;;  %s2370_s0 = sld [smem:[#allocation6_spill]] (!%p342_p9) }
  0x11   : > { %345 = sbr.rel (%p342_p9) target bundleno = 1020 (0x3fc), region = 64  ;;  %s377_s14 = sand.u32 (!%p342_p9), 1, %s1857_s20  }
  0x12   : > { %s1523_s15 = sshll.u32 (!%p342_p9), %s1955_s10, 4  ;;  %s378_s16 = scalar_lea.vmem (!%p342_p9), [#allocation3], %s377_s14 }
  0x13   : > { %s1427_s26 = scalar_lea.sflag (!%p342_p9), [#allocation4], %s377_s14 }
  0x16   : > { %v399_v1 = vld [vmem:[%s2357_s2 + $0x38] sm:$0xff]  ;;  %v390_v2 = vld [vmem:[%s2356_s1 + $0x30] sm:$0xff]  ;;  %v1867_v3 = vmov 1   ;;  %v1868_v4 = vmov 0   ;;  %v388_v5 = vld [vmem:[%s2356_s1 + $0x20] sm:$0xff]  ;;  %v1869_v9 = vmov 2   ;;  %v440_v38 = vlaneseq }
  0x17   : > { %1720 = vset.pattern.permute.xlu0 %v1867_v3  ;;  %1717 = vset.pattern.permute.xlu1 %v1868_v4  ;;  %v391_v6 = vld [vmem:[%s2356_s1 + $0x38] sm:$0xff]  ;;  %v2000_v7 = vld [vmem:[%s2356_s1 + $0x10] sm:$0xff]  ;;  %v389_v10 = vld [vmem:[%s2356_s1 + $0x28] sm:$0xff]  ;;  %vm700_vm0 = vcmask 523264   ;;  %s380_s25 = scalar_select %p379_p10, %s1955_s10, 1 }
  0x18   : > { %489 = vperm.xlu1 %1717, %v399_v1   ;;  %525 = vperm.xlu0 %1720, %v390_v2   ;;  %v398_v8 = vld [vmem:[%s2357_s2 + $0x30] sm:$0xff]  ;;  %v397_v11 = vld [vmem:[%s2357_s2 + $0x28] sm:$0xff]  ;;  %v387_v12 = vld [vmem:[%s2356_s1 + $0x18] sm:$0xff]  ;;  %v2116_v41 = vshrl.u32 %v440_v38, 7  ;;  %s1870_s10 = smov [#allocation3]  }
  0x19   : > { %v395_v13 = vld [vmem:[%s2357_s2 + $0x18] sm:$0xff]  ;;  %v396_v14 = vld [vmem:[%s2357_s2 + $0x20] sm:$0xff]  ;;  %v385_v15 = vld [vmem:[%s2356_s1 + $0x8] sm:$0xff]  ;;  %s1498_s12 = sshll.u32 %s380_s25, 2  ;;  %s1437_s25 = scalar_lea.hbm %s2366_s11, %s1523_s15 }
  0x1a   : > { %v393_v16 = vld [vmem:[%s2357_s2 + $0x8] sm:$0xff]  ;;  %v392_v17 = vld [vmem:[%s2357_s2] sm:$0xff]  ;;  %v658_v18 = vld [vmem:[%s2359_s4 + $0x30] sm:$0xff]  ;;  %s382_s17 = scalar_lea.vmem %s2370_s0, %s1498_s12  ;;  %v442_v44 = vsub.s32 0, %v2116_v41  ;;  %v534_v46 = vsub.s32 1, %v2116_v41  ;;  %v586_v51 = vsub.s32 2, %v2116_v41 }
  0x1b   : > { %v655_v19 = vld [vmem:[%s2359_s4 + $0x18] sm:$0xff]  ;;  %v394_v20 = vld [vmem:[%s2357_s2 + $0x10] sm:$0xff]  ;;  %v653_v21 = vld [vmem:[%s2359_s4 + $0x8] sm:$0xff]  ;;  %s1809_s12 = sshll.u32 %s1870_s10, 4  ;;  %s1810_s12 = int_to_ptr.vmem [resolvable:$false] %s1809_s12 }
  0x1c   : > { %1718 = vset.pattern.permute.xlu1 %v1867_v3  ;;  %517 = vperm.xlu0 %1720, %v388_v5   ;;  %v885_v22 = vld [vmem:[%s2361_s6 + $0x38] sm:$0xff]  ;;  %v384_v23 = vld [vmem:[%s2356_s1] sm:$0xff]  ;;  %v883_v24 = vld [vmem:[%s2361_s6 + $0x28] sm:$0xff]  ;;  %s1811_s13 = scalar_lea.vmem %s1810_s12, 32 }
  0x1d   : > { %529 = vperm.xlu1 %1718, %v391_v6   ;;  %v881_v25 = vld [vmem:[%s2361_s6 + $0x18] sm:$0xff]  ;;  %v879_v26 = vld [vmem:[%s2361_s6 + $0x8] sm:$0xff]  ;;  %v656_v29 = vld [vmem:[%s2359_s4 + $0x20] sm:$0xff] }
  0x1e   : > { %v659_v27 = vld [vmem:[%s2359_s4 + $0x38] sm:$0xff]  ;;  %v657_v28 = vld [vmem:[%s2359_s4 + $0x28] sm:$0xff]  ;;  %v1320_v30 = vld [vmem:[%s2364_s9] sm:$0x1] }
  0x1f   : > { %v654_v31 = vld [vmem:[%s2359_s4 + $0x10] sm:$0xff]  ;;  %v644_v32 = vld [vmem:[%s2358_s3] sm:$0xff]  ;;  %v1104_v52 = vld [vmem:[%s2363_s8 + $0x8] sm:$0xff] }
  0x20   : > { %509 = vperm.xlu0 %1720, %v2000_v7   ;;  %v652_v33 = vld [vmem:[%s2359_s4] sm:$0xff]  ;;  %1590 = vmatprep.mubr.msk.f32.mxu0 %vm700_vm0, %v644_v32  ;;  %v884_v34 = vld [vmem:[%s2361_s6 + $0x30] sm:$0xff]  ;;  %v1106_v63 = vld [vmem:[%s2363_s8 + $0x18] sm:$0xff] }
  0x21   : > { %1719 = vset.pattern.permute.xlu1 %v1868_v4  ;;  %v882_v35 = vld [vmem:[%s2361_s6 + $0x20] sm:$0xff]  ;;  %v880_v36 = vld [vmem:[%s2361_s6 + $0x10] sm:$0xff] }
  0x22   : > { %484 = vperm.xlu1 %1719, %v398_v8   ;;  %v878_v40 = vld [vmem:[%s2361_s6] sm:$0xff]  ;;  %v1105_v58 = vld [vmem:[%s2363_s8 + $0x10] sm:$0xff] }
  0x23   : > { %v1103_v45 = vld [vmem:[%s2363_s8] sm:$0xff] }
  0x24   : > { %1731 = vset.pattern.permute.xlu0 %v1868_v4  ;;  %v383_v48 = vld [vmem:[%s382_s17] sm:$0x7]  ;;  %s1439_s17 = sshll.u32 %s378_s16, 4  ;;  %s1440_s17 = int_to_ptr.vmem [resolvable:$true] %s1439_s17 }
  0x25   : > { %437 = vperm.xlu0 %1731, %v391_v6   ;;  %v2132_v50 = vrot.slane %v383_v48, %v442_v44  ;;  %v2138_v53 = vrot.slane %v383_v48, %v534_v46  ;;  %v2141_v56 = vrot.slane %v383_v48, %v586_v51  ;;  %s1805_s30 = scalar_lea.vmem %s1440_s17, 16  ;;  %p1812_p0 = scmp.lt.s32.totalorder %s1440_s17, %s1810_s12 }
  0x26   : > { %1721 = vset.pattern.permute.xlu1 %v1869_v9  ;;  %p1806_p11 = scmp.ne.s32.totalorder %s1440_s17, %s1805_s30  ;;  %p1813_p1 = scmp.lt.s32.totalorder %s1811_s13, %s1805_s30 }
  0x27   : > { %581 = vperm.xlu1 %1721, %v391_v6  }
  0x28   : > { %p1807_p12 = pnand %p1806_p11, %p1972_p5  ;;  %p1814_p2 = por %p1813_p1, %p1812_p0 }
  0x29   : > { %432 = vperm.xlu0 %1731, %v390_v2  }
  0x2a   : > { %p1808_p13 = pneg %p1807_p12 }
  0x2b   : > { %1722 = vset.pattern.permute.xlu1 %v1868_v4 }
  0x2c   : > { %422 = vperm.xlu1 %1722, %v388_v5   ;;  %p1815_p3 = pnand %p1814_p2, %p1808_p13 }
  0x2d   : > { %427 = vperm.xlu0 %1731, %v389_v10  }
  0x30   : > { %1723 = vset.pattern.permute.xlu1 %v1867_v3 }
  0x31   : > { %521 = vperm.xlu1 %1723, %v389_v10   ;;  %479 = vperm.xlu0 %1731, %v397_v11  }
  0x35   : > { %1724 = vset.pattern.permute.xlu1 %v1869_v9  ;;  %417 = vperm.xlu0 %1731, %v387_v12  }
  0x36   : > { %577 = vperm.xlu1 %1724, %v390_v2  }
  0x39   : > { %469 = vperm.xlu0 %1731, %v395_v13  }
  0x3a   : > { %1725 = vset.pattern.permute.xlu1 %v1868_v4 }
  0x3b   : > { %474 = vperm.xlu1 %1725, %v396_v14   ;;  %v1109_v14 = vld [vmem:[%s2363_s8 + $0x30] sm:$0xff] }
  0x3d   : > { %407 = vperm.xlu0 %1731, %v385_v15  }
  0x3f   : > { %1726 = vset.pattern.permute.xlu1 %v1869_v9 }
  0x40   : > { %573 = vperm.xlu1 %1726, %v389_v10   ;;  %v1108_v10 = vld [vmem:[%s2363_s8 + $0x28] sm:$0xff] }
  0x41   : > { %459 = vperm.xlu0 %1731, %v393_v16  }
  0x44   : > { %1727 = vset.pattern.permute.xlu1 %v1868_v4 }
  0x45   : > { %412 = vperm.xlu1 %1727, %v2000_v7   ;;  %454 = vperm.xlu0 %1731, %v392_v17  }
  0x49   : > { %1728 = vset.pattern.permute.xlu1 %v1867_v3  ;;  %1737 = vset.pattern.permute.xlu0 %v1869_v9 }
  0x4a   : > { %513 = vperm.xlu1 %1728, %v387_v12   ;;  %557 = vperm.xlu0 %1737, %v385_v15  }
  0x4e   : > { %1729 = vset.pattern.permute.xlu1 %v1869_v9  ;;  %1740 = vset.pattern.permute.xlu0 %v1868_v4 }
  0x4f   : > { %569 = vperm.xlu1 %1729, %v388_v5   ;;  %692 = vperm.xlu0 %1740, %v658_v18   ;;  %v1107_v5 = vld [vmem:[%s2363_s8 + $0x20] sm:$0xff] }
  0x53   : > { %1730 = vset.pattern.permute.xlu1 %v1868_v4  ;;  %677 = vperm.xlu0 %1740, %v655_v19  }
  0x54   : > { %464 = vperm.xlu1 %1730, %v394_v20   ;;  %v1110_v20 = vld [vmem:[%s2363_s8 + $0x38] sm:$0xff] }
  0x57   : > { %667 = vperm.xlu0 %1740, %v653_v21  }
  0x58   : > { %1732 = vset.pattern.permute.xlu1 %v1869_v9 }
  0x59   : > { %565 = vperm.xlu1 %1732, %v387_v12  }
  0x5b   : > { %923 = vperm.xlu0 %1740, %v885_v22  }
  0x5d   : > { %1733 = vset.pattern.permute.xlu1 %v1868_v4 }
  0x5e   : > { %402 = vperm.xlu1 %1733, %v384_v23  }
  0x5f   : > { %913 = vperm.xlu0 %1740, %v883_v24  }
  0x62   : > { %1734 = vset.pattern.permute.xlu1 %v1867_v3 }
  0x63   : > { %505 = vperm.xlu1 %1734, %v385_v15   ;;  %903 = vperm.xlu0 %1740, %v881_v25  }
  0x67   : > { %1735 = vset.pattern.permute.xlu1 %v1869_v9  ;;  %893 = vperm.xlu0 %1740, %v879_v26  }
  0x68   : > { %561 = vperm.xlu1 %1735, %v2000_v7  }
  0x6c   : > { %1736 = vset.pattern.permute.xlu1 %v1867_v3 }
  0x6d   : > { %501 = vperm.xlu1 %1736, %v384_v23  }
  0x71   : > { %1738 = vset.pattern.permute.xlu1 %v1869_v9 }
  0x72   : > { %553 = vperm.xlu1 %1738, %v384_v23  }
  0x76   : > { %1739 = vset.pattern.permute.xlu1 %v1868_v4 }
  0x77   : > { %697 = vperm.xlu1 %1739, %v659_v27  }
  0x7b   : > { %687 = vperm.xlu1 %1739, %v657_v28  }
  0x7f   : > { %682 = vperm.xlu1 %1739, %v656_v29  }
  0x83   : > { %672 = vperm.xlu1 %1739, %v654_v31  }
  0x85   : > { %1322 = vxpose.xlu0.b32.start.end [1/1] (short) (narrow) %v1320_v30, 64 }
  0x87   : > { %662 = vperm.xlu1 %1739, %v652_v33  }
  0x8b   : > { %918 = vperm.xlu1 %1739, %v884_v34  }
  0x8f   : > { %908 = vperm.xlu1 %1739, %v882_v35  }
  0x93   : > { %v490_v37 = vpop.permute.xlu1 %489  ;;  %v526_v39 = vpop.permute.xlu0 %525  ;;  %898 = vperm.xlu1 %1739, %v880_v36  }
  0x94   : > { %v542_v8 = vmul.f32 %v2138_v53, %v526_v39 }
  0x97   : > { %v2118_v42 = vpop.permute.xlu0 %517  ;;  %888 = vperm.xlu1 %1739, %v878_v40  }
  0x98   : > { %v530_v43 = vpop.permute.xlu1 %529  ;;  %v540_v40 = vmul.f32 %v2138_v53, %v2118_v42 }
  0x99   : > { %v543_v59 = vmul.f32 %v2138_v53, %v530_v43 }
  0x9b   : > { %v2128_v47 = vpop.permute.xlu0 %509  ;;  %1113 = vperm.xlu1 %1739, %v1103_v45  }
  0x9c   : > { %v538_v42 = vmul.f32 %v2138_v53, %v2128_v47 }
  0x9d   : > { %v485_v49 = vpop.permute.xlu1 %484 }
  0x9f   : > { %1118 = vperm.xlu1 %1739, %v1104_v52  }
  0xa0   : > { %v438_v54 = vpop.permute.xlu0 %437 }
  0xa1   : > { %v451_v55 = vmul.f32 %v2132_v50, %v438_v54 }
  0xa2   : > { %v582_v57 = vpop.permute.xlu1 %581 }
  0xa3   : > { %v499_v60 = vadd.f32 %v490_v37, %v451_v55  ;;  %v595_v62 = vmul.f32 %v2141_v56, %v582_v57  ;;  %1123 = vperm.xlu1 %1739, %v1105_v58  }
  0xa4   : > { %v433_v1 = vpop.permute.xlu0 %432 }
  0xa5   : > { %v551_v61 = vadd.f32 %v543_v59, %v499_v60  ;;  %v450_v4 = vmul.f32 %v2132_v50, %v433_v1 }
  0xa7   : > { %v603_v0 = vadd.f32 %v595_v62, %v551_v61  ;;  %v423_v2 = vpop.permute.xlu1 %422  ;;  %1128 = vperm.xlu1 %1739, %v1106_v63   ;;  %v498_v9 = vadd.f32 %v485_v49, %v450_v4 }
  0xa8   : > { %v428_v7 = vpop.permute.xlu0 %427  ;;  %v448_v37 = vmul.f32 %v2132_v50, %v423_v2 }
  0xa9   : > { %v611_v3 = vmul.f32 0.5, %v603_v0  ;;  %v550_v12 = vadd.f32 %v542_v8, %v498_v9  ;;  %v449_v16 = vmul.f32 %v2132_v50, %v428_v7 }
  0xab   : > { %1741 = vtanh.f32 %v611_v3  ;;  %1133 = vperm.xlu1 %1739, %v1107_v5  }
  0xac   : > { %v522_v6 = vpop.permute.xlu1 %521  ;;  %v480_v15 = vpop.permute.xlu0 %479 }
  0xad   : > { %v541_v23 = vmul.f32 %v2138_v53, %v522_v6  ;;  %v497_v24 = vadd.f32 %v480_v15, %v449_v16 }
  0xaf   : > { %1138 = vperm.xlu1 %1739, %v1108_v10   ;;  %v549_v28 = vadd.f32 %v541_v23, %v497_v24 }
  0xb0   : > { %v418_v21 = vpop.permute.xlu0 %417 }
  0xb1   : > { %v578_v11 = vpop.permute.xlu1 %577  ;;  %v447_v54 = vmul.f32 %v2132_v50, %v418_v21 }
  0xb2   : > { %v594_v13 = vmul.f32 %v2141_v56, %v578_v11 }
  0xb3   : > { %1143 = vperm.xlu1 %1739, %v1109_v14  }
  0xb4   : > { %v602_v17 = vadd.f32 %v594_v13, %v550_v12  ;;  %v470_v30 = vpop.permute.xlu0 %469 }
  0xb6   : > { %v610_v18 = vmul.f32 0.5, %v602_v17  ;;  %v475_v19 = vpop.permute.xlu1 %474 }
  0xb7   : > { %1148 = vperm.xlu1 %1739, %v1110_v20   ;;  %v496_v43 = vadd.f32 %v475_v19, %v448_v37 }
  0xb8   : > { %v1742_v22 = vpop.eup %1741  ;;  %1743 = vtanh.f32 %v610_v18  ;;  %v408_v35 = vpop.permute.xlu0 %407 }
  0xb9   : > { %v627_v25 = vmul.f32 0.5, %v1742_v22  ;;  %v548_v51 = vadd.f32 %v540_v40, %v496_v43  ;;  %v445_v12 = vmul.f32 %v2132_v50, %v408_v35 }
  0xbb   : > { %v574_v26 = vpop.permute.xlu1 %573  ;;  %v635_v27 = vadd.f32 0.5, %v627_v25 }
  0xbc   : > { %v593_v29 = vmul.f32 %v2141_v56, %v574_v26  ;;  %v460_v46 = vpop.permute.xlu0 %459 }
  0xbd   : > { %v643_v31 = vmul.f32 %v635_v27, %v603_v0  ;;  %v495_v0 = vadd.f32 %v470_v30, %v447_v54  ;;  %v493_v16 = vadd.f32 %v460_v46, %v445_v12 }
  0xbe   : > { %v601_v32 = vadd.f32 %v593_v29, %v549_v28 }
  0xbf   : > { %1574 = vmatprep.subr.mxu0 %v643_v31 }
  0xc0   : > { %v609_v33 = vmul.f32 0.5, %v601_v32  ;;  %v413_v34 = vpop.permute.xlu1 %412  ;;  %1575 = vmatpush3.msra.mxu0 %v643_v31  ;;  %v455_v59 = vpop.permute.xlu0 %454 }
  0xc1   : > { %v446_v57 = vmul.f32 %v2132_v50, %v413_v34 }
  0xc2   : > { %1745 = vtanh.f32 %v609_v33 }
  0xc5   : > { %v1744_v36 = vpop.eup %1743  ;;  %v514_v38 = vpop.permute.xlu1 %513 }
  0xc6   : > { %v626_v39 = vmul.f32 0.5, %v1744_v36  ;;  %v539_v1 = vmul.f32 %v2138_v53, %v514_v38  ;;  %v558_v4 = vpop.permute.xlu0 %557 }
  0xc7   : > { %v589_v18 = vmul.f32 %v2141_v56, %v558_v4  ;;  %v648_v4 = vld [vmem:[%s2358_s3 + $0x20] sm:$0xff] }
  0xc8   : > { %v634_v45 = vadd.f32 0.5, %v626_v39  ;;  %v547_v7 = vadd.f32 %v539_v1, %v495_v0  ;;  %v645_v0 = vld [vmem:[%s2358_s3 + $0x8] sm:$0xff]  ;;  %v646_v1 = vld [vmem:[%s2358_s3 + $0x10] sm:$0xff] }
  0xca   : > { %v570_v48 = vpop.permute.xlu1 %569  ;;  %v642_v49 = vmul.f32 %v634_v45, %v602_v17  ;;  %v2179_v10 = vpop.permute.xlu0 %692 }
  0xcb   : > { %v592_v52 = vmul.f32 %v2141_v56, %v570_v48 }
  0xcc   : > { %1576 = vmatprep.subr.mxu0 %v642_v49 }
  0xcd   : > { %v600_v55 = vadd.f32 %v592_v52, %v548_v51  ;;  %1577 = vmatpush3.msra.mxu0 %v642_v49 }
  0xce   : > { %v2182_v13 = vpop.permute.xlu0 %677 }
  0xcf   : > { %v1746_v58 = vpop.eup %1745  ;;  %v608_v60 = vmul.f32 0.5, %v600_v55  ;;  %v465_v61 = vpop.permute.xlu1 %464 }
  0xd0   : > { %v494_v62 = vadd.f32 %v465_v61, %v446_v57  ;;  %v625_v63 = vmul.f32 0.5, %v1746_v58 }
  0xd1   : > { %1747 = vtanh.f32 %v608_v60 }
  0xd2   : > { %v546_v2 = vadd.f32 %v538_v42, %v494_v62  ;;  %v633_v3 = vadd.f32 0.5, %v625_v63  ;;  %v2186_v25 = vpop.permute.xlu0 %667 }
  0xd4   : > { %v566_v5 = vpop.permute.xlu1 %565  ;;  %v641_v6 = vmul.f32 %v633_v3, %v601_v32  ;;  %v647_v3 = vld [vmem:[%s2358_s3 + $0x18] sm:$0xff] }
  0xd5   : > { %v591_v8 = vmul.f32 %v2141_v56, %v566_v5 }
  0xd6   : > { %1578 = vmatprep.subr.mxu0 %v641_v6  ;;  %v2190_v34 = vpop.permute.xlu0 %923 }
  0xd7   : > { %v599_v9 = vadd.f32 %v591_v8, %v547_v7  ;;  %1579 = vmatpush3.msra.mxu0 %v641_v6  ;;  %v649_v6 = vld [vmem:[%s2358_s3 + $0x28] sm:$0xff]  ;;  %v650_v7 = vld [vmem:[%s2358_s3 + $0x30] sm:$0xff] }
  0xd9   : > { %v607_v47 = vmul.f32 0.5, %v599_v9  ;;  %v403_v11 = vpop.permute.xlu1 %402 }
  0xda   : > { %v444_v30 = vmul.f32 %v2132_v50, %v403_v11  ;;  %v2194_v45 = vpop.permute.xlu0 %913 }
  0xdb   : > { %1749 = vtanh.f32 %v607_v47 }
  0xdc   : > { %v492_v37 = vadd.f32 %v455_v59, %v444_v30 }
  0xde   : > { %v1748_v14 = vpop.eup %1747  ;;  %v506_v15 = vpop.permute.xlu1 %505 }
  0xdf   : > { %v537_v17 = vmul.f32 %v2138_v53, %v506_v15  ;;  %v624_v19 = vmul.f32 0.5, %v1748_v14  ;;  %v2196_v49 = vpop.permute.xlu0 %903  ;;  %v1321_v14 = vld [vmem:[#allocation2] sm:$0x1] }
  0xe0   : > { %v870_v15 = vld [vmem:[%s2360_s5] sm:$0xff] }
  0xe1   : > { %v545_v20 = vadd.f32 %v537_v17, %v493_v16  ;;  %v632_v21 = vadd.f32 0.5, %v624_v19  ;;  %1618 = vmatprep.mubr.msk.f32.mxu1 %vm700_vm0, %v870_v15 }
  0xe3   : > { %v597_v22 = vadd.f32 %v589_v18, %v545_v20  ;;  %v562_v23 = vpop.permute.xlu1 %561  ;;  %v640_v24 = vmul.f32 %v632_v21, %v600_v55  ;;  %v2198_v57 = vpop.permute.xlu0 %893 }
  0xe4   : > { %v590_v26 = vmul.f32 %v2141_v56, %v562_v23 }
  0xe5   : > { %v605_v27 = vmul.f32 0.5, %v597_v22  ;;  %1580 = vmatprep.subr.mxu0 %v640_v24 }
  0xe6   : > { %v598_v28 = vadd.f32 %v590_v26, %v546_v2  ;;  %1581 = vmatpush3.msra.mxu0 %v640_v24 }
  0xe7   : > { %1751 = vtanh.f32 %v605_v27 }
  0xe8   : > { %v1750_v29 = vpop.eup %1749  ;;  %v606_v31 = vmul.f32 0.5, %v598_v28  ;;  %v502_v32 = vpop.permute.xlu1 %501 }
  0xe9   : > { %v623_v33 = vmul.f32 0.5, %v1750_v29  ;;  %v536_v35 = vmul.f32 %v2138_v53, %v502_v32 }
  0xea   : > { %1753 = vtanh.f32 %v606_v31 }
  0xeb   : > { %v631_v36 = vadd.f32 0.5, %v623_v33  ;;  %v544_v40 = vadd.f32 %v536_v35, %v492_v37 }
  0xed   : > { %v554_v38 = vpop.permute.xlu1 %553  ;;  %v639_v39 = vmul.f32 %v631_v36, %v599_v9  ;;  %v651_v9 = vld [vmem:[%s2358_s3 + $0x38] sm:$0xff] }
  0xee   : > { %v588_v43 = vmul.f32 %v2141_v56, %v554_v38 }
  0xef   : > { %1582 = vmatprep.subr.mxu0 %v639_v39 }
  0xf0   : > { %v596_v46 = vadd.f32 %v588_v43, %v544_v40  ;;  %1583 = vmatpush3.msra.mxu0 %v639_v39 }
  0xf2   : > { %v604_v50 = vmul.f32 0.5, %v596_v46  ;;  %v698_v16 = vpop.permute.xlu1 %697 }
  0xf4   : > { %v1752_v48 = vpop.eup %1751  ;;  %1755 = vtanh.f32 %v604_v50 }
  0xf5   : > { %v621_v51 = vmul.f32 0.5, %v1752_v48 }
  0xf6   : > { %v688_v17 = vpop.permute.xlu1 %687 }
  0xf7   : > { %v1754_v52 = vpop.eup %1753  ;;  %v629_v55 = vadd.f32 0.5, %v621_v51 }
  0xf8   : > { %v622_v53 = vmul.f32 0.5, %v1754_v52 }
  0xf9   : > { %v637_v56 = vmul.f32 %v629_v55, %v597_v22 }
  0xfa   : > { %v630_v54 = vadd.f32 0.5, %v622_v53  ;;  %v683_v20 = vpop.permute.xlu1 %682 }
  0xfc   : > { %v638_v58 = vmul.f32 %v630_v54, %v598_v28 }
  0xfe   : > { %1584 = vmatprep.subr.mxu0 %v638_v58  ;;  %v673_v26 = vpop.permute.xlu1 %672 }
  0xff   : > { %1585 = vmatpush3.msra.mxu0 %v638_v58 }
 0x100   : > { %1586 = vmatprep.subr.mxu0 %v637_v56 }
 0x101   : > { %v1756_v59 = vpop.eup %1755  ;;  %1587 = vmatpush3.msra.mxu0 %v637_v56  ;;  %v1338_v60 = vpop.trf.xlu0 }
 0x102   : > { %v620_v61 = vmul.f32 0.5, %v1756_v59  ;;  %1356 = vperm.xlu0 %1740, %v1338_v60   ;;  %v663_v43 = vpop.permute.xlu1 %662 }
 0x104   : > { %v628_v42 = vadd.f32 0.5, %v620_v61 }
 0x105   : > { %v1339_v62 = vpop.trf.xlu0 }
 0x106   : > { %v636_v63 = vmul.f32 %v628_v42, %v596_v46  ;;  %1361 = vperm.xlu1 %1739, %v1339_v62  }
 0x108   : > { %1588 = vmatprep.subr.mxu0 %v636_v63 }
 0x109   : > { %1589 = vmatpush3.msra.mxu0 %v636_v63  ;;  %v1340_v2 = vpop.trf.xlu0 }
 0x10a   : > { %1591 = vmatmul.mubr.msk.f32.vlgmr.msra.gmra.mxu0 %vm700_vm0, %v645_v0  ;;  %1366 = vperm.xlu1 %1739, %v1340_v2  }
 0x10b   : > { %1593 = vmatprep.mubr.msk.f32.mxu0 %vm700_vm0, %v646_v1 }
 0x10d   : > { %v1341_v5 = vpop.trf.xlu0 }
 0x10e   : > { %1594 = vmatmul.mubr.msk.f32.gmra.mxu0 %vm700_vm0, %v647_v3  ;;  %1371 = vperm.xlu1 %1739, %v1341_v5  }
 0x10f   : > { %1596 = vmatprep.mubr.msk.f32.mxu0 %vm700_vm0, %v648_v4 }
 0x111   : > { %v1342_v8 = vpop.trf.xlu0 }
 0x112   : > { %1597 = vmatmul.mubr.msk.f32.gmra.mxu0 %vm700_vm0, %v649_v6  ;;  %1376 = vperm.xlu1 %1739, %v1342_v8  }
 0x113   : > { %1599 = vmatprep.mubr.msk.f32.mxu0 %vm700_vm0, %v650_v7 }
 0x115   : > { %v1343_v47 = vpop.trf.xlu0 }
 0x116   : > { %1600 = vmatmul.mubr.msk.f32.gmra.mxu0 %vm700_vm0, %v651_v9  ;;  %1381 = vperm.xlu1 %1739, %v1343_v47  }
 0x119   : > { %v1344_v11 = vpop.trf.xlu0 }
 0x11a   : > { %1386 = vperm.xlu1 %1739, %v1344_v11  }
 0x11d   : > { %v1345_v12 = vpop.trf.xlu0 }
 0x11e   : > { %1391 = vperm.xlu1 %1739, %v1345_v12  }
 0x122   : > { %1417 = vperm.xlu1 %1739, %v1321_v14  }
 0x1ca   : > { %v1592_v18 = vpop.f32.mrf.mxu0 }
 0x1cb   : > { %v797_v38 = vadd.f32 %v1592_v18, %v2186_v25 }
 0x1cc   : > { %v791_v19 = vpop.f32.mrf.mxu0 }
 0x1cd   : > { %v792_v46 = vadd.f32 %v791_v19, %v663_v43  ;;  %v831_v48 = vmul.f32 0.5, %v797_v38  ;;  %v871_v19 = vld [vmem:[%s2360_s5 + $0x8] sm:$0xff] }
 0x1ce   : > { %v1595_v21 = vpop.f32.mrf.mxu0 }
 0x1cf   : > { %v807_v27 = vadd.f32 %v1595_v21, %v2182_v13  ;;  %v830_v51 = vmul.f32 0.5, %v792_v46  ;;  %v873_v21 = vld [vmem:[%s2360_s5 + $0x18] sm:$0xff] }
 0x1d0   : > { %v801_v22 = vpop.f32.mrf.mxu0 }
 0x1d1   : > { %v802_v32 = vadd.f32 %v801_v22, %v673_v26  ;;  %v833_v36 = vmul.f32 0.5, %v807_v27  ;;  %v874_v22 = vld [vmem:[%s2360_s5 + $0x20] sm:$0xff]  ;;  %v877_v26 = vld [vmem:[%s2360_s5 + $0x38] sm:$0xff] }
 0x1d2   : > { %v1598_v23 = vpop.f32.mrf.mxu0 }
 0x1d3   : > { %v817_v24 = vadd.f32 %v1598_v23, %v688_v17  ;;  %v832_v50 = vmul.f32 0.5, %v802_v32  ;;  %v875_v23 = vld [vmem:[%s2360_s5 + $0x28] sm:$0xff] }
 0x1d4   : > { %v811_v28 = vpop.f32.mrf.mxu0 }
 0x1d5   : > { %v835_v29 = vmul.f32 0.5, %v817_v24  ;;  %v812_v30 = vadd.f32 %v811_v28, %v683_v20  ;;  %v872_v20 = vld [vmem:[%s2360_s5 + $0x10] sm:$0xff]  ;;  %v1099_v28 = vld [vmem:[%s2362_s7 + $0x20] sm:$0xff] }
 0x1d6   : > { %v1601_v31 = vpop.f32.mrf.mxu0 }
 0x1d7   : > { %v834_v33 = vmul.f32 0.5, %v812_v30  ;;  %v827_v35 = vadd.f32 %v1601_v31, %v698_v16  ;;  %1757 = vtanh.f32 %v835_v29  ;;  %v919_v29 = vpop.permute.xlu1 %918 }
 0x1d8   : > { %v821_v37 = vpop.f32.mrf.mxu0 }
 0x1d9   : > { %v837_v39 = vmul.f32 0.5, %v827_v35  ;;  %v822_v40 = vadd.f32 %v821_v37, %v2179_v10  ;;  %1759 = vtanh.f32 %v834_v33 }
 0x1db   : > { %1761 = vtanh.f32 %v837_v39  ;;  %v836_v13 = vmul.f32 0.5, %v822_v40 }
 0x1dc   : > { %1763 = vtanh.f32 %v833_v36 }
 0x1dd   : > { %1765 = vtanh.f32 %v836_v13 }
 0x1de   : > { %1767 = vtanh.f32 %v832_v50 }
 0x1df   : > { %1769 = vtanh.f32 %v831_v48 }
 0x1e0   : > { %1771 = vtanh.f32 %v830_v51 }
 0x1e4   : > { %v1758_v52 = vpop.eup %1757 }
 0x1e5   : > { %v851_v55 = vmul.f32 0.5, %v1758_v52 }
 0x1e6   : > { %v1760_v53 = vpop.eup %1759 }
 0x1e7   : > { %v850_v56 = vmul.f32 0.5, %v1760_v53  ;;  %v859_v62 = vadd.f32 0.5, %v851_v55 }
 0x1e8   : > { %v1762_v25 = vpop.eup %1761 }
 0x1e9   : > { %v1764_v54 = vpop.eup %1763  ;;  %v853_v58 = vmul.f32 0.5, %v1762_v25  ;;  %v858_v3 = vadd.f32 0.5, %v850_v56  ;;  %v867_v8 = vmul.f32 %v859_v62, %v817_v24  ;;  %v876_v24 = vld [vmem:[%s2360_s5 + $0x30] sm:$0xff] }
 0x1ea   : > { %v1766_v10 = vpop.eup %1765  ;;  %v849_v42 = vmul.f32 0.5, %v1764_v54 }
 0x1eb   : > { %v852_v59 = vmul.f32 0.5, %v1766_v10  ;;  %v861_v60 = vadd.f32 0.5, %v853_v58  ;;  %v1768_v61 = vpop.eup %1767  ;;  %v866_v11 = vmul.f32 %v858_v3, %v812_v30 }
 0x1ec   : > { %v1770_v1 = vpop.eup %1769  ;;  %v848_v2 = vmul.f32 0.5, %v1768_v61  ;;  %v857_v7 = vadd.f32 0.5, %v849_v42 }
 0x1ed   : > { %v860_v63 = vadd.f32 0.5, %v852_v59  ;;  %v869_v0 = vmul.f32 %v861_v60, %v827_v35  ;;  %v1772_v5 = vpop.eup %1771  ;;  %v847_v6 = vmul.f32 0.5, %v1770_v1 }
 0x1ee   : > { %v846_v9 = vmul.f32 0.5, %v1772_v5  ;;  %v856_v47 = vadd.f32 0.5, %v848_v2  ;;  %v865_v14 = vmul.f32 %v857_v7, %v807_v27  ;;  %v1095_v27 = vld [vmem:[%s2362_s7] sm:$0xff] }
 0x1ef   : > { %v868_v4 = vmul.f32 %v860_v63, %v822_v40  ;;  %1602 = vmatprep.subr.mxu1 %v869_v0  ;;  %v855_v12 = vadd.f32 0.5, %v847_v6  ;;  %1646 = vmatprep.mubr.msk.f32.mxu0 %vm700_vm0, %v1095_v27  ;;  %v1096_v27 = vld [vmem:[%s2362_s7 + $0x8] sm:$0xff] }
 0x1f0   : > { %1603 = vmatpush3.msra.mxu1 %v869_v0  ;;  %v854_v15 = vadd.f32 0.5, %v846_v9  ;;  %v864_v16 = vmul.f32 %v856_v47, %v802_v32  ;;  %v909_v32 = vpop.permute.xlu1 %908 }
 0x1f1   : > { %1604 = vmatprep.subr.mxu1 %v868_v4  ;;  %v863_v17 = vmul.f32 %v855_v12, %v797_v38 }
 0x1f2   : > { %1605 = vmatpush3.msra.mxu1 %v868_v4  ;;  %v862_v18 = vmul.f32 %v854_v15, %v792_v46 }
 0x1f3   : > { %1606 = vmatprep.subr.mxu1 %v867_v8 }
 0x1f4   : > { %1607 = vmatpush3.msra.mxu1 %v867_v8  ;;  %v899_v38 = vpop.permute.xlu1 %898 }
 0x1f5   : > { %1608 = vmatprep.subr.mxu1 %v866_v11 }
 0x1f6   : > { %1609 = vmatpush3.msra.mxu1 %v866_v11 }
 0x1f7   : > { %1610 = vmatprep.subr.mxu1 %v865_v14 }
 0x1f8   : > { %1611 = vmatpush3.msra.mxu1 %v865_v14 }
 0x1f9   : > { %1612 = vmatprep.subr.mxu1 %v864_v16 }
 0x1fa   : > { %1613 = vmatpush3.msra.mxu1 %v864_v16 }
 0x1fb   : > { %1614 = vmatprep.subr.mxu1 %v863_v17 }
 0x1fc   : > { %1615 = vmatpush3.msra.mxu1 %v863_v17 }
 0x1fd   : > { %1616 = vmatprep.subr.mxu1 %v862_v18 }
 0x1fe   : > { %1617 = vmatpush3.msra.mxu1 %v862_v18 }
 0x1ff   : > { %1619 = vmatmul.mubr.msk.f32.vlgmr.msra.gmra.mxu1 %vm700_vm0, %v871_v19 }
 0x200   : > { %1621 = vmatprep.mubr.msk.f32.mxu1 %vm700_vm0, %v872_v20 }
 0x203   : > { %1622 = vmatmul.mubr.msk.f32.gmra.mxu1 %vm700_vm0, %v873_v21 }
 0x204   : > { %1624 = vmatprep.mubr.msk.f32.mxu1 %vm700_vm0, %v874_v22 }
 0x207   : > { %1625 = vmatmul.mubr.msk.f32.gmra.mxu1 %vm700_vm0, %v875_v23 }
 0x208   : > { %1627 = vmatprep.mubr.msk.f32.mxu1 %vm700_vm0, %v876_v24 }
 0x20b   : > { %1628 = vmatmul.mubr.msk.f32.gmra.mxu1 %vm700_vm0, %v877_v26 }
 0x20c   : > { %1652 = vmatprep.mubr.msk.f32.mxu1 %vm700_vm0, %v1099_v28  ;;  %v1100_v28 = vld [vmem:[%s2362_s7 + $0x28] sm:$0xff] }
 0x2bf   : > { %v1620_v30 = vpop.f32.mrf.mxu1 }
 0x2c0   : > { %v2280_v25 = vadd.f32 %v1620_v30, %v2198_v57  ;;  %v1101_v30 = vld [vmem:[%s2362_s7 + $0x30] sm:$0xff] }
 0x2c1   : > { %v1016_v31 = vpop.f32.mrf.mxu1 }
 0x2c3   : > { %v1623_v33 = vpop.f32.mrf.mxu1 }
 0x2c4   : > { %v2273_v39 = vadd.f32 %v1623_v33, %v2196_v49  ;;  %v889_v49 = vpop.permute.xlu1 %888 }
 0x2c5   : > { %v1026_v35 = vpop.f32.mrf.mxu1  ;;  %v2282_v55 = vadd.f32 %v1016_v31, %v889_v49  ;;  %v1098_v31 = vld [vmem:[%s2362_s7 + $0x18] sm:$0xff] }
 0x2c6   : > { %v2275_v13 = vadd.f32 %v1026_v35, %v899_v38  ;;  %v1058_v52 = vmul.f32 0.5, %v2273_v39 }
 0x2c7   : > { %v1626_v36 = vpop.f32.mrf.mxu1  ;;  %v1055_v56 = vmul.f32 0.5, %v2282_v55 }
 0x2c8   : > { %v1042_v37 = vadd.f32 %v1626_v36, %v2194_v45  ;;  %v1057_v58 = vmul.f32 0.5, %v2275_v13  ;;  %v1114_v33 = vpop.permute.xlu1 %1113 }
 0x2c9   : > { %v1036_v40 = vpop.f32.mrf.mxu1 }
 0x2ca   : > { %v1060_v43 = vmul.f32 0.5, %v1042_v37  ;;  %v1037_v46 = vadd.f32 %v1036_v40, %v909_v32  ;;  %v1102_v32 = vld [vmem:[%s2362_s7 + $0x38] sm:$0xff] }
 0x2cb   : > { %v1629_v50 = vpop.f32.mrf.mxu1 }
 0x2cc   : > { %v1059_v48 = vmul.f32 0.5, %v1037_v46  ;;  %v1052_v51 = vadd.f32 %v1629_v50, %v2190_v34  ;;  %1773 = vtanh.f32 %v1060_v43  ;;  %v1056_v34 = vmul.f32 0.5, %v2280_v25  ;;  %v1119_v35 = vpop.permute.xlu1 %1118 }
 0x2cd   : > { %v1046_v53 = vpop.f32.mrf.mxu1 }
 0x2ce   : > { %v1062_v45 = vmul.f32 0.5, %v1052_v51  ;;  %v1047_v54 = vadd.f32 %v1046_v53, %v919_v29  ;;  %1775 = vtanh.f32 %v1059_v48  ;;  %v1097_v29 = vld [vmem:[%s2362_s7 + $0x10] sm:$0xff] }
 0x2d0   : > { %1777 = vtanh.f32 %v1062_v45  ;;  %v1061_v10 = vmul.f32 0.5, %v1047_v54  ;;  %v1124_v36 = vpop.permute.xlu1 %1123 }
 0x2d1   : > { %1779 = vtanh.f32 %v1058_v52 }
 0x2d2   : > { %1781 = vtanh.f32 %v1061_v10 }
 0x2d3   : > { %1783 = vtanh.f32 %v1057_v58 }
 0x2d4   : > { %1785 = vtanh.f32 %v1056_v34 }
 0x2d5   : > { %1787 = vtanh.f32 %v1055_v56 }
 0x2d9   : > { %v1774_v57 = vpop.eup %1773 }
 0x2da   : > { %v1076_v42 = vmul.f32 0.5, %v1774_v57 }
 0x2db   : > { %v1776_v59 = vpop.eup %1775 }
 0x2dc   : > { %v1075_v0 = vmul.f32 0.5, %v1776_v59  ;;  %v1084_v5 = vadd.f32 0.5, %v1076_v42 }
 0x2dd   : > { %v1778_v60 = vpop.eup %1777 }
 0x2de   : > { %v1780_v61 = vpop.eup %1779  ;;  %v1078_v62 = vmul.f32 0.5, %v1778_v60  ;;  %v1083_v47 = vadd.f32 0.5, %v1075_v0  ;;  %v1092_v16 = vmul.f32 %v1084_v5, %v1042_v37  ;;  %v1129_v37 = vpop.permute.xlu1 %1128 }
 0x2df   : > { %v1782_v63 = vpop.eup %1781  ;;  %v1074_v4 = vmul.f32 0.5, %v1780_v61 }
 0x2e0   : > { %v1086_v1 = vadd.f32 0.5, %v1078_v62  ;;  %v1077_v2 = vmul.f32 0.5, %v1782_v63  ;;  %v1784_v3 = vpop.eup %1783  ;;  %v1091_v19 = vmul.f32 %v1083_v47, %v1037_v46 }
 0x2e1   : > { %v1786_v8 = vpop.eup %1785  ;;  %v1073_v9 = vmul.f32 0.5, %v1784_v3  ;;  %v1082_v15 = vadd.f32 0.5, %v1074_v4 }
 0x2e2   : > { %v1094_v6 = vmul.f32 %v1086_v1, %v1052_v51  ;;  %v1085_v7 = vadd.f32 0.5, %v1077_v2  ;;  %v1788_v12 = vpop.eup %1787  ;;  %v1072_v14 = vmul.f32 0.5, %v1786_v8  ;;  %v1134_v38 = vpop.permute.xlu1 %1133 }
 0x2e3   : > { %v1071_v17 = vmul.f32 0.5, %v1788_v12  ;;  %v1081_v18 = vadd.f32 0.5, %v1073_v9  ;;  %v1090_v21 = vmul.f32 %v1082_v15, %v2273_v39 }
 0x2e4   : > { %v1093_v11 = vmul.f32 %v1085_v7, %v1047_v54  ;;  %1630 = vmatprep.subr.mxu0 %v1094_v6  ;;  %1658 = vmatprep.subr.mxu1 %v1094_v6  ;;  %v1080_v20 = vadd.f32 0.5, %v1072_v14 }
 0x2e5   : > { %1631 = vmatpush3.msra.mxu0 %v1094_v6  ;;  %1666 = vmatpush3.msra.mxu1 %v1094_v6  ;;  %v1079_v22 = vadd.f32 0.5, %v1071_v17  ;;  %v1089_v23 = vmul.f32 %v1081_v18, %v2275_v13 }
 0x2e6   : > { %1632 = vmatprep.subr.mxu0 %v1093_v11  ;;  %1659 = vmatprep.subr.mxu1 %v1093_v11  ;;  %v1088_v24 = vmul.f32 %v1080_v20, %v2280_v25  ;;  %v1139_v39 = vpop.permute.xlu1 %1138 }
 0x2e7   : > { %1633 = vmatpush3.msra.mxu0 %v1093_v11  ;;  %1667 = vmatpush3.msra.mxu1 %v1093_v11  ;;  %v1087_v26 = vmul.f32 %v1079_v22, %v2282_v55 }
 0x2e8   : > { %1634 = vmatprep.subr.mxu0 %v1092_v16  ;;  %1660 = vmatprep.subr.mxu1 %v1092_v16 }
 0x2e9   : > { %1635 = vmatpush3.msra.mxu0 %v1092_v16  ;;  %1668 = vmatpush3.msra.mxu1 %v1092_v16 }
 0x2ea   : > { %1636 = vmatprep.subr.mxu0 %v1091_v19  ;;  %1661 = vmatprep.subr.mxu1 %v1091_v19  ;;  %v1144_v40 = vpop.permute.xlu1 %1143 }
 0x2eb   : > { %1637 = vmatpush3.msra.mxu0 %v1091_v19  ;;  %1669 = vmatpush3.msra.mxu1 %v1091_v19 }
 0x2ec   : > { %1638 = vmatprep.subr.mxu0 %v1090_v21  ;;  %1662 = vmatprep.subr.mxu1 %v1090_v21 }
 0x2ed   : > { %1639 = vmatpush3.msra.mxu0 %v1090_v21  ;;  %1670 = vmatpush3.msra.mxu1 %v1090_v21 }
 0x2ee   : > { %1640 = vmatprep.subr.mxu0 %v1089_v23  ;;  %1663 = vmatprep.subr.mxu1 %v1089_v23  ;;  %v1149_v43 = vpop.permute.xlu1 %1148 }
 0x2ef   : > { %1641 = vmatpush3.msra.mxu0 %v1089_v23  ;;  %1671 = vmatpush3.msra.mxu1 %v1089_v23 }
 0x2f0   : > { %1642 = vmatprep.subr.mxu0 %v1088_v24  ;;  %1664 = vmatprep.subr.mxu1 %v1088_v24 }
 0x2f1   : > { %1643 = vmatpush3.msra.mxu0 %v1088_v24  ;;  %1672 = vmatpush3.msra.mxu1 %v1088_v24 }
 0x2f2   : > { %1644 = vmatprep.subr.mxu0 %v1087_v26  ;;  %1665 = vmatprep.subr.mxu1 %v1087_v26  ;;  %v1362_v53 = vpop.permute.xlu1 %1361 }
 0x2f3   : > { %1645 = vmatpush3.msra.mxu0 %v1087_v26  ;;  %1673 = vmatpush3.msra.mxu1 %v1087_v26  ;;  %v1357_v26 = vpop.permute.xlu0 %1356 }
 0x2f4   : > { %1647 = vmatmul.mubr.msk.f32.vlgmr.msra.gmra.mxu0 %vm700_vm0, %v1096_v27  ;;  %1653 = vmatmul.mubr.msk.f32.vlgmr.msra.gmra.mxu1 %vm700_vm0, %v1100_v28 }
 0x2f5   : > { %1649 = vmatprep.mubr.msk.f32.mxu0 %vm700_vm0, %v1097_v29  ;;  %1655 = vmatprep.mubr.msk.f32.mxu1 %vm700_vm0, %v1101_v30 }
 0x2f6   : > { %v1367_v2 = vpop.permute.xlu1 %1366 }
 0x2f8   : > { %1650 = vmatmul.mubr.msk.f32.gmra.mxu0 %vm700_vm0, %v1098_v31  ;;  %1656 = vmatmul.mubr.msk.f32.gmra.mxu1 %vm700_vm0, %v1102_v32 }
 0x2fa   : > { %v1372_v3 = vpop.permute.xlu1 %1371 }
 0x2fe   : > { %v1377_v12 = vpop.permute.xlu1 %1376 }
 0x302   : > { %v1382_v31 = vpop.permute.xlu1 %1381 }
 0x3b4   : > { %v1648_v46 = vpop.f32.mrf.mxu0  ;;  %v1654_v50 = vpop.f32.mrf.mxu1 }
 0x3b5   : > { %v1247_v13 = vadd.f32 %v1648_v46, %v1119_v35  ;;  %v2315_v48 = vadd.f32 %v1654_v50, %v1139_v39 }
 0x3b6   : > { %v1241_v51 = vpop.f32.mrf.mxu0  ;;  %v1261_v52 = vpop.f32.mrf.mxu1 }
 0x3b7   : > { %v1281_v25 = vmul.f32 0.5, %v1247_v13  ;;  %v1285_v45 = vmul.f32 0.5, %v2315_v48  ;;  %v1242_v54 = vadd.f32 %v1241_v51, %v1114_v33  ;;  %v1262_v49 = vadd.f32 %v1261_v52, %v1134_v38  ;;  %v1387_v52 = vpop.permute.xlu1 %1386 }
 0x3b8   : > { %v1651_v55 = vpop.f32.mrf.mxu0  ;;  %v1657_v58 = vpop.f32.mrf.mxu1 }
 0x3b9   : > { %1789 = vtanh.f32 %v1281_v25  ;;  %v1280_v10 = vmul.f32 0.5, %v1242_v54  ;;  %v1284_v34 = vmul.f32 0.5, %v1262_v49  ;;  %v1257_v56 = vadd.f32 %v1651_v55, %v1129_v37 }
 0x3ba   : > { %1791 = vtanh.f32 %v1285_v45  ;;  %v1277_v57 = vadd.f32 %v1657_v58, %v1149_v43  ;;  %v1251_v59 = vpop.f32.mrf.mxu0  ;;  %v1271_v60 = vpop.f32.mrf.mxu1 }
 0x3bb   : > { %1793 = vtanh.f32 %v1280_v10  ;;  %v1283_v61 = vmul.f32 0.5, %v1257_v56  ;;  %v1252_v42 = vadd.f32 %v1251_v59, %v1124_v36  ;;  %v1272_v62 = vadd.f32 %v1271_v60, %v1144_v40 }
 0x3bc   : > { %1795 = vtanh.f32 %v1284_v34  ;;  %v1287_v63 = vmul.f32 0.5, %v1277_v57 }
 0x3bd   : > { %1797 = vtanh.f32 %v1283_v61  ;;  %v1282_v0 = vmul.f32 0.5, %v1252_v42  ;;  %v1286_v1 = vmul.f32 0.5, %v1272_v62 }
 0x3bf   : > { %1799 = vtanh.f32 %v1282_v0 }
 0x3c0   : > { %1801 = vtanh.f32 %v1286_v1 }
 0x3c1   : > { %1803 = vtanh.f32 %v1287_v63 }
 0x3c6   : > { %v1790_v4 = vpop.eup %1789 }
 0x3c7   : > { %v1792_v5 = vpop.eup %1791  ;;  %v1297_v6 = vmul.f32 0.5, %v1790_v4 }
 0x3c8   : > { %v1794_v7 = vpop.eup %1793  ;;  %v1301_v18 = vmul.f32 0.5, %v1792_v5 }
 0x3c9   : > { %v1796_v8 = vpop.eup %1795  ;;  %v1305_v9 = vadd.f32 0.5, %v1297_v6  ;;  %v1296_v47 = vmul.f32 0.5, %v1794_v7 }
 0x3ca   : > { %v1798_v11 = vpop.eup %1797  ;;  %v1300_v15 = vmul.f32 0.5, %v1796_v8  ;;  %v1309_v32 = vadd.f32 0.5, %v1301_v18 }
 0x3cb   : > { %v1304_v14 = vadd.f32 0.5, %v1296_v47  ;;  %v1299_v16 = vmul.f32 0.5, %v1798_v11  ;;  %v1313_v20 = vmul.f32 %v1305_v9, %v1247_v13 }
 0x3cc   : > { %v1800_v17 = vpop.eup %1799  ;;  %v1308_v28 = vadd.f32 0.5, %v1300_v15  ;;  %v1317_v46 = vmul.f32 %v1309_v32, %v2315_v48 }
 0x3cd   : > { %v1802_v19 = vpop.eup %1801  ;;  %v1312_v21 = vmul.f32 %v1304_v14, %v1242_v54  ;;  %v1307_v22 = vadd.f32 0.5, %v1299_v16  ;;  %v1298_v23 = vmul.f32 0.5, %v1800_v17  ;;  %v1395_v33 = vmul.f32 %v1362_v53, %v1313_v20 }
 0x3ce   : > { %v1804_v24 = vpop.eup %1803  ;;  %v1302_v30 = vmul.f32 0.5, %v1802_v19  ;;  %v1316_v39 = vmul.f32 %v1308_v28, %v1262_v49  ;;  %v1399_v55 = vmul.f32 %v1382_v31, %v1317_v46 }
 0x3cf   : > { %v1394_v27 = vmul.f32 %v1357_v26, %v1312_v21  ;;  %v1306_v29 = vadd.f32 0.5, %v1298_v23  ;;  %v1315_v35 = vmul.f32 %v1307_v22, %v1257_v56  ;;  %v1303_v36 = vmul.f32 0.5, %v1804_v24  ;;  %v1392_v56 = vpop.permute.xlu1 %1391 }
 0x3d0   : > { %v1310_v43 = vadd.f32 0.5, %v1302_v30  ;;  %v1398_v25 = vmul.f32 %v1377_v12, %v1316_v39 }
 0x3d1   : > { %v1314_v37 = vmul.f32 %v1306_v29, %v1252_v42  ;;  %v1402_v38 = vadd.f32 %v1395_v33, %v1394_v27  ;;  %v1397_v50 = vmul.f32 %v1372_v3, %v1315_v35  ;;  %v1311_v13 = vadd.f32 0.5, %v1303_v36 }
 0x3d2   : > { %v1318_v54 = vmul.f32 %v1310_v43, %v1272_v62 }
 0x3d3   : > { %v1396_v40 = vmul.f32 %v1367_v2, %v1314_v37  ;;  %v1319_v53 = vmul.f32 %v1311_v13, %v1277_v57  ;;  %v1418_v0 = vpop.permute.xlu1 %1417 }
 0x3d4   : > { %v1400_v10 = vmul.f32 %v1387_v52, %v1318_v54  ;;  %v1423_v57 = vrot.slane %v1418_v0, %v442_v44 }
 0x3d5   : > { %v1403_v51 = vadd.f32 %v1402_v38, %v1396_v40  ;;  %v1401_v49 = vmul.f32 %v1392_v56, %v1319_v53 }
 0x3d7   : > { %v1404_v45 = vadd.f32 %v1403_v51, %v1397_v50 }
 0x3d9   : > { %v1405_v58 = vadd.f32 %v1404_v45, %v1398_v25 }
 0x3db   : > { %v1406_v34 = vadd.f32 %v1405_v58, %v1399_v55 }
 0x3dd   : > { %v1407_v59 = vadd.f32 %v1406_v34, %v1400_v10 }
 0x3df   : > { %v1408_v60 = vadd.f32 %v1407_v59, %v1401_v49 }
 0x3e1   : > { %v1409_v61 = vrot.slane %v1408_v60, 4 }
 0x3e3   : > { %v1410_v48 = vadd.f32 %v1409_v61, %v1408_v60 }
 0x3e5   : > { %v1411_v42 = vrot.slane %v1410_v48, 2 }
 0x3e7   : > { %v1412_v63 = vadd.f32 %v1411_v42, %v1410_v48 }
 0x3e9   : > { %v1413_v1 = vrot.slane %v1412_v63, 1 }
 0x3eb   : > { %v1414_v62 = vadd.f32 %v1413_v1, %v1412_v63 }
 0x3ed   : > { %v1424_v2 = vadd.f32 %v1423_v57, %v1414_v62 }
 0x3ef   : > { %1425 = vst [vmem:[%s378_s16] sm:$0x1] %v1424_v2 }
 0x3f0   : > { %1818 = shalt.err (!%p1815_p3)
}
 0x3f1   : > { %s1819_s0 = scalar_lea.hbm %s1437_s25, 16  ;;  %s1823_s16 = scalar_lea.hbm %s2366_s11, 32 }
 0x3f2   : > { %p1820_p4 = scmp.ne.s32.totalorder %s1437_s25, %s1819_s0  ;;  %p1824_p9 = scmp.lt.s32.totalorder %s1437_s25, %s2366_s11 }
 0x3f3   : > { %p1825_p10 = scmp.lt.s32.totalorder %s1823_s16, %s1819_s0 }
 0x3f4   : > { %p1821_p7 = pnand %p1820_p4, %p1972_p5 }
 0x3f5   : > { %p1826_p11 = por %p1825_p10, %p1824_p9 }
 0x3f6   : > { %p1822_p8 = pneg %p1821_p7 }
 0x3f8   : > { %p1827_p12 = pnand %p1826_p11, %p1822_p8 }
 0x3fa   : > { %1830 = shalt.err (!%p1827_p12)
}
 0x3fb   : > { %1674 = dma.vmem_to_hbm [thread:$0]  (%p1972_p5), %s1440_s17, 16, %s1437_s25, %s1427_s26  }
 0x3fc PF: > { %p1680_p13 = scmp.ge.s32.totalorder %s1865_s22, 2  ;;  %s1451_s30 = sand.u32 1, %s1853_s19  }
 0x3fd   : > { %s1452_s10 = scalar_lea.sflag [#allocation4], %s1451_s30 }
 0x3fe   : > { %p1677_p0 = pnand %p1680_p13, %p1976_p6 }
 0x400   : > { %p1678_p1 = pneg %p1677_p0 }
 0x402   : > { %1848 = dma.done.wait (%p1678_p1), %s1452_s10, 16  }
 0x403   : > { %1850 = vsyncadd (%p1678_p1), %s1452_s10, 4294967280  ;;  %p23_p2 = scmp.ge.s32.totalorder %s1959_s24, 4   ;;  %s2371_s19 = smov %s1857_s20 }
 0x404   : > { %s2372_s20 = smov %s1861_s21  ;;  %s2373_s21 = smov %s1970_s27 }
 0x405   : > { %s2374_s22 = smov %s1959_s24  ;;  %25 = sbr.rel (!%p23_p2) target bundleno = 6 (0x6), region = 99 }
 0x40a   :  { %1456 = vsyncpa [#allocation4], 1 }
 0x40b   :  { %1458 = vsyncpa [#allocation4 + $0x1], 1 }

</bundles_post_ra>
